<compile_context>
chip_gen: v7x
topology: tpu7x:2x2x1
jax: 0.10.0
libtpu: 0.0.40
codegen_flags: <defaults>
</compile_context>

<pallas_src>
import functools

import jax
import jax.numpy as jnp
from jax.experimental import pallas as pl
from jax.experimental.pallas import tpu as pltpu


# ----------------------------- Pallas kernel --------------------------------
def cvae_kernel(
    xy_ref, eps_ref,
    w1_ref, b1_ref,
    w2_ref, b2_ref,
    wmuls_ref, bmuls_ref,
    w3z_ref, w3x_ref, b3_ref,
    w4_ref, b4_ref,
    w5_ref, b5_ref,
    out_ref,
):
    f32 = jnp.float32
    cdt = w1_ref.dtype                      # MXU input dtype (bf16)
    L = bmuls_ref.shape[1] // 2             # latent size
    F = w3x_ref.shape[0]                    # feature size

    xy = xy_ref[...]                        # (TB, F + C), bf16
    eps = eps_ref[...].astype(f32)          # (TB, L), f32 elementwise math

    # ----- encode -----
    # h1 = tanh(fc1(cat([x, y])))   (cat done on host)
    h1 = jnp.tanh(
        jnp.dot(xy, w1_ref[...], preferred_element_type=f32) + b1_ref[...]
    )
    # h2 = tanh(fc2(h1))
    h2 = jnp.tanh(
        jnp.dot(h1.astype(cdt), w2_ref[...], preferred_element_type=f32)
        + b2_ref[...]
    )
    # fused mu / log_std head: one dot into [mu | log_std]
    muls = (
        jnp.dot(h2.astype(cdt), wmuls_ref[...], preferred_element_type=f32)
        + bmuls_ref[...]
    )
    mu = muls[:, :L]
    log_std = muls[:, L:]

    # ----- reparametrize -----
    z = mu + eps * jnp.exp(log_std)

    # ----- decode (conditioned on x, as in forward()) -----
    x = xy[:, :F]                           # static lane slice of the xy block
    h3 = jnp.tanh(
        jnp.dot(z.astype(cdt), w3z_ref[...], preferred_element_type=f32)
        + jnp.dot(x, w3x_ref[...], preferred_element_type=f32)
        + b3_ref[...]
    )
    h4 = jnp.tanh(
        jnp.dot(h3.astype(cdt), w4_ref[...], preferred_element_type=f32)
        + b4_ref[...]
    )
    logits = (
        jnp.dot(h4.astype(cdt), w5_ref[...], preferred_element_type=f32)
        + b5_ref[...]
    )
    pred = jax.nn.sigmoid(logits)

    # single lane-dense output slab: [pred | mu | log_std | z]
    out_ref[...] = jnp.concatenate([pred, mu, log_std, z], axis=1).astype(
        out_ref.dtype
    )


# ----------------------------- host wrapper ---------------------------------
@functools.partial(jax.jit, static_argnames=("compute_dtype", "block_batch"))
def cvae_forward(x, y, eps, params, *, compute_dtype=jnp.bfloat16,
                 block_batch=1024):
    """Runs the CVAE forward.  params hold [in, out] weights, [1, out] biases."""
    B = x.shape[0]
    L = params["bmuls"].shape[1] // 2
    out_width = 1 + 3 * L

    # host-side concat for fc1; bf16 I/O, f32 biases
    xy = jnp.concatenate([x, y], axis=1).astype(compute_dtype)
    eps_c = eps.astype(compute_dtype)

    w = {n: params[n].astype(compute_dtype)
         for n in ("w1", "w2", "wmuls", "w3z", "w3x", "w4", "w5")}
    b = {n: params[n].astype(jnp.float32)
         for n in ("b1", "b2", "bmuls", "b3", "b4", "b5")}
    consts = (
        w["w1"], b["b1"],
        w["w2"], b["b2"],
        w["wmuls"], b["bmuls"],
        w["w3z"], w["w3x"], b["b3"],
        w["w4"], b["b4"],
        w["w5"], b["b5"],
    )

    # batch tile: <= block_batch rows (keeps VMEM use modest on v7x's 64 MiB),
    # multiple of 8 sublanes, or the full batch when it already fits.
    if B <= block_batch:
        tb = B
    else:
        tb = max(8, (block_batch // 8) * 8)
    grid = (pl.cdiv(B, tb),)

    def row_spec(width):
        return pl.BlockSpec((tb, width), lambda i: (i, 0))

    def const_spec(a):
        return pl.BlockSpec(a.shape, lambda i: (0, 0))   # resident, DMA'd once

    in_specs = [row_spec(xy.shape[1]), row_spec(L)] + [const_spec(a)
                                                       for a in consts]
    out_specs = row_spec(out_width)

    out = pl.pallas_call(
        cvae_kernel,
        out_shape=jax.ShapeDtypeStruct((B, out_width), jnp.float32),
        grid=grid,
        in_specs=in_specs,
        out_specs=out_specs,
        compiler_params=pltpu.CompilerParams(
            dimension_semantics=("parallel",),
        ),
    )(xy, eps_c, *consts)

    pred = out[:, 0:1]
    mu = out[:, 1:1 + L]
    log_std = out[:, 1 + L:1 + 2 * L]
    z = out[:, 1 + 2 * L:1 + 3 * L]
    return pred, mu, log_std, z


# ----------------------------- parameter init -------------------------------
def init_params(key, feature_size, class_size, latent_size):
    """Deterministic synthetic init; shapes mirror the PyTorch module,
    stored pre-transposed as [in, out] with biases [1, out]."""
    def linear(key, fan_in, fan_out):
        kw, kb = jax.random.split(key)
        bound = 1.0 / jnp.sqrt(fan_in)
        w_ = jax.random.uniform(kw, (fan_in, fan_out), jnp.float32, -bound, bound)
        b_ = jax.random.uniform(kb, (1, fan_out), jnp.float32, -bound, bound)
        return w_, b_

    keys = jax.random.split(key, 7)
    F_, C_, L_ = feature_size, class_size, latent_size

    w1, b1 = linear(keys[0], F_ + C_, 25)      # fc1
    w2, b2 = linear(keys[1], 25, 5)            # fc2
    wmu, bmu = linear(keys[2], 5, L_)          # fc2_mu
    wls, bls = linear(keys[3], 5, L_)          # fc2_log_std
    w3, b3 = linear(keys[4], L_ + F_, 25)      # fc3
    w4, b4 = linear(keys[5], 25, 10)           # fc4
    w5, b5 = linear(keys[6], 10, 1)            # fc5

    return {
        "w1": w1, "b1": b1,
        "w2": w2, "b2": b2,
        # fused mu / log_std head: one (5, 2L) matmul, sliced [mu | log_std]
        "wmuls": jnp.concatenate([wmu, wls], axis=1),
        "bmuls": jnp.concatenate([bmu, bls], axis=1),
        # fc3 split along its concat axis: cat([z, x]) @ w3 == z@w3z + x@w3x
        "w3z": w3[:L_, :], "w3x": w3[L_:, :], "b3": b3,
        "w4": w4, "b4": b4,
        "w5": w5, "b5": b5,
    }


# --------------------- reference (pure JAX, same precision) ------------------
def cvae_reference(x, y, eps, p, compute_dtype=jnp.bfloat16):
    f32 = jnp.float32
    L = p["bmuls"].shape[1] // 2
    cd = lambda a: a.astype(compute_dtype)
    dot = lambda a, w_: jnp.dot(cd(a), cd(w_), preferred_element_type=f32)

    xy = jnp.concatenate([x, y], axis=1)
    h1 = jnp.tanh(dot(xy, p["w1"]) + p["b1"])
    h2 = jnp.tanh(dot(h1, p["w2"]) + p["b2"])
    muls = dot(h2, p["wmuls"]) + p["bmuls"]
    mu, log_std = muls[:, :L], muls[:, L:]
    z = mu + cd(eps).astype(f32) * jnp.exp(log_std)
    h3 = jnp.tanh(dot(z, p["w3z"]) + dot(x, p["w3x"]) + p["b3"])
    h4 = jnp.tanh(dot(h3, p["w4"]) + p["b4"])
    pred = jax.nn.sigmoid(dot(h4, p["w5"]) + p["b5"])
    return pred, mu, log_std, z


# ----------------------------------- main ------------------------------------
if __name__ == "__main__":
    feature_size, class_size, latent_size = 16, 4, 8
    batch = 64

    key = jax.random.PRNGKey(0)
    k_params, k_x, k_y, k_eps = jax.random.split(key, 4)

    params = init_params(k_params, feature_size, class_size, latent_size)
    x = jax.random.normal(k_x, (batch, feature_size), jnp.float32)
    y = jax.random.normal(k_y, (batch, class_size), jnp.float32)
    eps = jax.random.normal(k_eps, (batch, latent_size), jnp.float32)  # randn_like

    # small block_batch so the demo exercises a multi-step (pipelined) grid
    pred, mu, log_std, z = cvae_forward(x, y, eps, params, block_batch=32)
    jax.block_until_ready((pred, mu, log_std, z))

    # sanity check against a pure-JAX reference with identical mixed precision
    ref = cvae_reference(x, y, eps, params)
    for got, want in zip((pred, mu, log_std, z), ref):
        assert got.shape == want.shape
        assert jnp.allclose(got, want, atol=1e-2, rtol=1e-2)

    print("KERNEL_OK")
</pallas_src>

<mosaic_0001>
module attributes {stable_mosaic.version = 11 : i64} {
  func.func @cvae_kernel(%arg0: i32, %arg1: memref<32x20xbf16, #tpu.memory_space<vmem>>, %arg2: memref<32x8xbf16, #tpu.memory_space<vmem>>, %arg3: memref<20x25xbf16, #tpu.memory_space<vmem>>, %arg4: memref<1x25xf32, #tpu.memory_space<vmem>>, %arg5: memref<25x5xbf16, #tpu.memory_space<vmem>>, %arg6: memref<1x5xf32, #tpu.memory_space<vmem>>, %arg7: memref<5x16xbf16, #tpu.memory_space<vmem>>, %arg8: memref<1x16xf32, #tpu.memory_space<vmem>>, %arg9: memref<8x25xbf16, #tpu.memory_space<vmem>>, %arg10: memref<16x25xbf16, #tpu.memory_space<vmem>>, %arg11: memref<1x25xf32, #tpu.memory_space<vmem>>, %arg12: memref<25x10xbf16, #tpu.memory_space<vmem>>, %arg13: memref<1x10xf32, #tpu.memory_space<vmem>>, %arg14: memref<10x1xbf16, #tpu.memory_space<vmem>>, %arg15: memref<1x1xf32, #tpu.memory_space<vmem>>, %arg16: memref<32x25xf32, #tpu.memory_space<vmem>>) attributes {dimension_semantics = [#tpu.dimension_semantics<parallel>], iteration_bounds = array<i64: 2>, scalar_prefetch = 0 : i64, scratch_operands = 0 : i64, tpu.core_type = #tpu.core_type<tc>, window_params = [{transform_indices = @transform_0, window_bounds = array<i64: 32, 20>}, {transform_indices = @transform_1, window_bounds = array<i64: 32, 8>}, {pipeline_mode = #tpu.pipeline_mode<synchronous>, transform_indices = @transform_2, window_bounds = array<i64: 20, 25>}, {pipeline_mode = #tpu.pipeline_mode<synchronous>, transform_indices = @transform_3, window_bounds = array<i64: 1, 25>}, {pipeline_mode = #tpu.pipeline_mode<synchronous>, transform_indices = @transform_4, window_bounds = array<i64: 25, 5>}, {pipeline_mode = #tpu.pipeline_mode<synchronous>, transform_indices = @transform_5, window_bounds = array<i64: 1, 5>}, {pipeline_mode = #tpu.pipeline_mode<synchronous>, transform_indices = @transform_6, window_bounds = array<i64: 5, 16>}, {pipeline_mode = #tpu.pipeline_mode<synchronous>, transform_indices = @transform_7, window_bounds = array<i64: 1, 16>}, {pipeline_mode = #tpu.pipeline_mode<synchronous>, transform_indices = @transform_8, window_bounds = array<i64: 8, 25>}, {pipeline_mode = #tpu.pipeline_mode<synchronous>, transform_indices = @transform_9, window_bounds = array<i64: 16, 25>}, {pipeline_mode = #tpu.pipeline_mode<synchronous>, transform_indices = @transform_10, window_bounds = array<i64: 1, 25>}, {pipeline_mode = #tpu.pipeline_mode<synchronous>, transform_indices = @transform_11, window_bounds = array<i64: 25, 10>}, {pipeline_mode = #tpu.pipeline_mode<synchronous>, transform_indices = @transform_12, window_bounds = array<i64: 1, 10>}, {pipeline_mode = #tpu.pipeline_mode<synchronous>, transform_indices = @transform_13, window_bounds = array<i64: 10, 1>}, {pipeline_mode = #tpu.pipeline_mode<synchronous>, transform_indices = @transform_14, window_bounds = array<i64: 1, 1>}, {transform_indices = @transform_15, window_bounds = array<i64: 32, 25>}]} {
    %c0 = arith.constant 0 : index
    %c0_0 = arith.constant 0 : index
    %0 = vector.load %arg1[%c0, %c0_0] : memref<32x20xbf16, #tpu.memory_space<vmem>>, vector<32x20xbf16>
    %c0_1 = arith.constant 0 : index
    %c0_2 = arith.constant 0 : index
    %1 = vector.load %arg2[%c0_1, %c0_2] : memref<32x8xbf16, #tpu.memory_space<vmem>>, vector<32x8xbf16>
    %2 = arith.extf %1 : vector<32x8xbf16> to vector<32x8xf32>
    %c0_3 = arith.constant 0 : index
    %c0_4 = arith.constant 0 : index
    %3 = vector.load %arg3[%c0_3, %c0_4] : memref<20x25xbf16, #tpu.memory_space<vmem>>, vector<20x25xbf16>
    %cst = arith.constant dense<0.000000e+00> : vector<32x25xf32>
    %4 = tpu.matmul %0, %3, %cst {dimension_numbers = #tpu.dot_dimension_numbers<[1], [0], [0], [1], [0, 0, 1, 1], [], []>} : vector<32x20xbf16>, vector<20x25xbf16>, vector<32x25xf32> -> vector<32x25xf32>
    %c0_5 = arith.constant 0 : index
    %c0_6 = arith.constant 0 : index
    %5 = vector.load %arg4[%c0_5, %c0_6] : memref<1x25xf32, #tpu.memory_space<vmem>>, vector<1x25xf32>
    %6 = vector.broadcast %5 : vector<1x25xf32> to vector<32x25xf32>
    %7 = arith.addf %4, %6 : vector<32x25xf32>
    %8 = math.tanh %7 : vector<32x25xf32>
    %9 = arith.truncf %8 : vector<32x25xf32> to vector<32x25xbf16>
    %c0_7 = arith.constant 0 : index
    %c0_8 = arith.constant 0 : index
    %10 = vector.load %arg5[%c0_7, %c0_8] : memref<25x5xbf16, #tpu.memory_space<vmem>>, vector<25x5xbf16>
    %cst_9 = arith.constant dense<0.000000e+00> : vector<32x5xf32>
    %11 = tpu.matmul %9, %10, %cst_9 {dimension_numbers = #tpu.dot_dimension_numbers<[1], [0], [0], [1], [0, 0, 1, 1], [], []>} : vector<32x25xbf16>, vector<25x5xbf16>, vector<32x5xf32> -> vector<32x5xf32>
    %c0_10 = arith.constant 0 : index
    %c0_11 = arith.constant 0 : index
    %12 = vector.load %arg6[%c0_10, %c0_11] : memref<1x5xf32, #tpu.memory_space<vmem>>, vector<1x5xf32>
    %13 = vector.broadcast %12 : vector<1x5xf32> to vector<32x5xf32>
    %14 = arith.addf %11, %13 : vector<32x5xf32>
    %15 = math.tanh %14 : vector<32x5xf32>
    %16 = arith.truncf %15 : vector<32x5xf32> to vector<32x5xbf16>
    %c0_12 = arith.constant 0 : index
    %c0_13 = arith.constant 0 : index
    %17 = vector.load %arg7[%c0_12, %c0_13] : memref<5x16xbf16, #tpu.memory_space<vmem>>, vector<5x16xbf16>
    %cst_14 = arith.constant dense<0.000000e+00> : vector<32x16xf32>
    %18 = tpu.matmul %16, %17, %cst_14 {dimension_numbers = #tpu.dot_dimension_numbers<[1], [0], [0], [1], [0, 0, 1, 1], [], []>} : vector<32x5xbf16>, vector<5x16xbf16>, vector<32x16xf32> -> vector<32x16xf32>
    %c0_15 = arith.constant 0 : index
    %c0_16 = arith.constant 0 : index
    %19 = vector.load %arg8[%c0_15, %c0_16] : memref<1x16xf32, #tpu.memory_space<vmem>>, vector<1x16xf32>
    %20 = vector.broadcast %19 : vector<1x16xf32> to vector<32x16xf32>
    %21 = arith.addf %18, %20 : vector<32x16xf32>
    %22 = vector.extract_strided_slice %21 {offsets = [0, 0], sizes = [32, 8], strides = [1, 1]} : vector<32x16xf32> to vector<32x8xf32>
    %23 = vector.extract_strided_slice %21 {offsets = [0, 8], sizes = [32, 8], strides = [1, 1]} : vector<32x16xf32> to vector<32x8xf32>
    %24 = math.exp %23 : vector<32x8xf32>
    %25 = arith.mulf %2, %24 : vector<32x8xf32>
    %26 = arith.addf %22, %25 : vector<32x8xf32>
    %27 = vector.extract_strided_slice %0 {offsets = [0, 0], sizes = [32, 16], strides = [1, 1]} : vector<32x20xbf16> to vector<32x16xbf16>
    %28 = arith.truncf %26 : vector<32x8xf32> to vector<32x8xbf16>
    %c0_17 = arith.constant 0 : index
    %c0_18 = arith.constant 0 : index
    %29 = vector.load %arg9[%c0_17, %c0_18] : memref<8x25xbf16, #tpu.memory_space<vmem>>, vector<8x25xbf16>
    %cst_19 = arith.constant dense<0.000000e+00> : vector<32x25xf32>
    %30 = tpu.matmul %28, %29, %cst_19 {dimension_numbers = #tpu.dot_dimension_numbers<[1], [0], [0], [1], [0, 0, 1, 1], [], []>} : vector<32x8xbf16>, vector<8x25xbf16>, vector<32x25xf32> -> vector<32x25xf32>
    %c0_20 = arith.constant 0 : index
    %c0_21 = arith.constant 0 : index
    %31 = vector.load %arg10[%c0_20, %c0_21] : memref<16x25xbf16, #tpu.memory_space<vmem>>, vector<16x25xbf16>
    %cst_22 = arith.constant dense<0.000000e+00> : vector<32x25xf32>
    %32 = tpu.matmul %27, %31, %cst_22 {dimension_numbers = #tpu.dot_dimension_numbers<[1], [0], [0], [1], [0, 0, 1, 1], [], []>} : vector<32x16xbf16>, vector<16x25xbf16>, vector<32x25xf32> -> vector<32x25xf32>
    %33 = arith.addf %30, %32 : vector<32x25xf32>
    %c0_23 = arith.constant 0 : index
    %c0_24 = arith.constant 0 : index
    %34 = vector.load %arg11[%c0_23, %c0_24] : memref<1x25xf32, #tpu.memory_space<vmem>>, vector<1x25xf32>
    %35 = vector.broadcast %34 : vector<1x25xf32> to vector<32x25xf32>
    %36 = arith.addf %33, %35 : vector<32x25xf32>
    %37 = math.tanh %36 : vector<32x25xf32>
    %38 = arith.truncf %37 : vector<32x25xf32> to vector<32x25xbf16>
    %c0_25 = arith.constant 0 : index
    %c0_26 = arith.constant 0 : index
    %39 = vector.load %arg12[%c0_25, %c0_26] : memref<25x10xbf16, #tpu.memory_space<vmem>>, vector<25x10xbf16>
    %cst_27 = arith.constant dense<0.000000e+00> : vector<32x10xf32>
    %40 = tpu.matmul %38, %39, %cst_27 {dimension_numbers = #tpu.dot_dimension_numbers<[1], [0], [0], [1], [0, 0, 1, 1], [], []>} : vector<32x25xbf16>, vector<25x10xbf16>, vector<32x10xf32> -> vector<32x10xf32>
    %c0_28 = arith.constant 0 : index
    %c0_29 = arith.constant 0 : index
    %41 = vector.load %arg13[%c0_28, %c0_29] : memref<1x10xf32, #tpu.memory_space<vmem>>, vector<1x10xf32>
    %42 = vector.broadcast %41 : vector<1x10xf32> to vector<32x10xf32>
    %43 = arith.addf %40, %42 : vector<32x10xf32>
    %44 = math.tanh %43 : vector<32x10xf32>
    %45 = arith.truncf %44 : vector<32x10xf32> to vector<32x10xbf16>
    %c0_30 = arith.constant 0 : index
    %c0_31 = arith.constant 0 : index
    %46 = vector.load %arg14[%c0_30, %c0_31] : memref<10x1xbf16, #tpu.memory_space<vmem>>, vector<10x1xbf16>
    %cst_32 = arith.constant dense<0.000000e+00> : vector<32x1xf32>
    %47 = tpu.matmul %45, %46, %cst_32 {dimension_numbers = #tpu.dot_dimension_numbers<[1], [0], [0], [1], [0, 0, 1, 1], [], []>} : vector<32x10xbf16>, vector<10x1xbf16>, vector<32x1xf32> -> vector<32x1xf32>
    %c0_33 = arith.constant 0 : index
    %c0_34 = arith.constant 0 : index
    %48 = vector.load %arg15[%c0_33, %c0_34] : memref<1x1xf32, #tpu.memory_space<vmem>>, vector<1x1xf32>
    %49 = vector.broadcast %48 : vector<1x1xf32> to vector<32x1xf32>
    %50 = arith.addf %47, %49 : vector<32x1xf32>
    %51 = arith.negf %50 : vector<32x1xf32>
    %52 = math.exp %51 : vector<32x1xf32>
    %cst_35 = arith.constant 1.000000e+00 : f32
    %53 = vector.broadcast %cst_35 : f32 to vector<32x1xf32>
    %54 = arith.addf %53, %52 : vector<32x1xf32>
    %55 = arith.divf %53, %54 : vector<32x1xf32>
    %56 = tpu.concatenate %55, %22, %23, %26 in 1 : vector<32x1xf32>, vector<32x8xf32>, vector<32x8xf32>, vector<32x8xf32> -> vector<32x25xf32>
    %c0_36 = arith.constant 0 : index
    %c0_37 = arith.constant 0 : index
    %57 = vector.load %arg16[%c0_36, %c0_37] : memref<32x25xf32, #tpu.memory_space<vmem>>, vector<32x25xf32>
    tpu.vector_store %arg16[%c0_36, %c0_37], %56 {strides = array<i32>} : memref<32x25xf32, #tpu.memory_space<vmem>>, vector<32x25xf32>,
    return
  }
  func.func @transform_0(%arg0: i32) -> (i32, i32) {
    %c0_i32 = arith.constant 0 : i32
    %c0_i32_0 = arith.constant 0 : i32
    return %arg0, %c0_i32 : i32, i32
  }
  func.func @transform_1(%arg0: i32) -> (i32, i32) {
    %c0_i32 = arith.constant 0 : i32
    %c0_i32_0 = arith.constant 0 : i32
    return %arg0, %c0_i32 : i32, i32
  }
  func.func @transform_2(%arg0: i32) -> (i32, i32) {
    %c0_i32 = arith.constant 0 : i32
    %c0_i32_0 = arith.constant 0 : i32
    %c0_i32_1 = arith.constant 0 : i32
    return %c0_i32, %c0_i32_0 : i32, i32
  }
  func.func @transform_3(%arg0: i32) -> (i32, i32) {
    %c0_i32 = arith.constant 0 : i32
    %c0_i32_0 = arith.constant 0 : i32
    %c0_i32_1 = arith.constant 0 : i32
    return %c0_i32, %c0_i32_0 : i32, i32
  }
  func.func @transform_4(%arg0: i32) -> (i32, i32) {
    %c0_i32 = arith.constant 0 : i32
    %c0_i32_0 = arith.constant 0 : i32
    %c0_i32_1 = arith.constant 0 : i32
    return %c0_i32, %c0_i32_0 : i32, i32
  }
  func.func @transform_5(%arg0: i32) -> (i32, i32) {
    %c0_i32 = arith.constant 0 : i32
    %c0_i32_0 = arith.constant 0 : i32
    %c0_i32_1 = arith.constant 0 : i32
    return %c0_i32, %c0_i32_0 : i32, i32
  }
  func.func @transform_6(%arg0: i32) -> (i32, i32) {
    %c0_i32 = arith.constant 0 : i32
    %c0_i32_0 = arith.constant 0 : i32
    %c0_i32_1 = arith.constant 0 : i32
    return %c0_i32, %c0_i32_0 : i32, i32
  }
  func.func @transform_7(%arg0: i32) -> (i32, i32) {
    %c0_i32 = arith.constant 0 : i32
    %c0_i32_0 = arith.constant 0 : i32
    %c0_i32_1 = arith.constant 0 : i32
    return %c0_i32, %c0_i32_0 : i32, i32
  }
  func.func @transform_8(%arg0: i32) -> (i32, i32) {
    %c0_i32 = arith.constant 0 : i32
    %c0_i32_0 = arith.constant 0 : i32
    %c0_i32_1 = arith.constant 0 : i32
    return %c0_i32, %c0_i32_0 : i32, i32
  }
  func.func @transform_9(%arg0: i32) -> (i32, i32) {
    %c0_i32 = arith.constant 0 : i32
    %c0_i32_0 = arith.constant 0 : i32
    %c0_i32_1 = arith.constant 0 : i32
    return %c0_i32, %c0_i32_0 : i32, i32
  }
  func.func @transform_10(%arg0: i32) -> (i32, i32) {
    %c0_i32 = arith.constant 0 : i32
    %c0_i32_0 = arith.constant 0 : i32
    %c0_i32_1 = arith.constant 0 : i32
    return %c0_i32, %c0_i32_0 : i32, i32
  }
  func.func @transform_11(%arg0: i32) -> (i32, i32) {
    %c0_i32 = arith.constant 0 : i32
    %c0_i32_0 = arith.constant 0 : i32
    %c0_i32_1 = arith.constant 0 : i32
    return %c0_i32, %c0_i32_0 : i32, i32
  }
  func.func @transform_12(%arg0: i32) -> (i32, i32) {
    %c0_i32 = arith.constant 0 : i32
    %c0_i32_0 = arith.constant 0 : i32
    %c0_i32_1 = arith.constant 0 : i32
    return %c0_i32, %c0_i32_0 : i32, i32
  }
  func.func @transform_13(%arg0: i32) -> (i32, i32) {
    %c0_i32 = arith.constant 0 : i32
    %c0_i32_0 = arith.constant 0 : i32
    %c0_i32_1 = arith.constant 0 : i32
    return %c0_i32, %c0_i32_0 : i32, i32
  }
  func.func @transform_14(%arg0: i32) -> (i32, i32) {
    %c0_i32 = arith.constant 0 : i32
    %c0_i32_0 = arith.constant 0 : i32
    %c0_i32_1 = arith.constant 0 : i32
    return %c0_i32, %c0_i32_0 : i32, i32
  }
  func.func @transform_15(%arg0: i32) -> (i32, i32) {
    %c0_i32 = arith.constant 0 : i32
    %c0_i32_0 = arith.constant 0 : i32
    return %arg0, %c0_i32 : i32, i32
  }
}

</mosaic_0001>

<bundles_post_ra>
// kernel: cvae_forward.1
= control target key start
LH: loop header
LB: loop body
LE: loop exit
PB: predicated region body
PF: predicated region fallthrough
CT: control target
= control target key end

     0   :  { %s1574_s20 = smov 0   ;;  %s1688_s0 = inlined_call_operand.vmem [shape: bf16[64,20], index: 0, kind: input, shape index: {}]   ;;  %s1689_s1 = inlined_call_operand.vmem [shape: bf16[64,8], index: 1, kind: input, shape index: {}]   ;;  %s1690_s2 = inlined_call_operand.vmem [shape: bf16[20,25], index: 2, kind: input, shape index: {}]   ;;  %s1691_s3 = inlined_call_operand.vmem [shape: f32[1,25], index: 3, kind: input, shape index: {}]   ;;  %s1692_s4 = inlined_call_operand.vmem [shape: bf16[25,5], index: 4, kind: input, shape index: {}]   ;;  %s1693_s5 = inlined_call_operand.vmem [shape: f32[1,5], index: 5, kind: input, shape index: {}]   ;;  %s1694_s6 = inlined_call_operand.vmem [shape: bf16[5,16], index: 6, kind: input, shape index: {}]   ;;  %s1695_s7 = inlined_call_operand.vmem [shape: f32[1,16], index: 7, kind: input, shape index: {}]   ;;  %s1696_s8 = inlined_call_operand.vmem [shape: bf16[8,25], index: 8, kind: input, shape index: {}]   ;;  %s1697_s9 = inlined_call_operand.vmem [shape: bf16[16,25], index: 9, kind: input, shape index: {}]   ;;  %s1698_s10 = inlined_call_operand.vmem [shape: f32[1,25], index: 10, kind: input, shape index: {}]   ;;  %s1699_s11 = inlined_call_operand.vmem [shape: bf16[25,10], index: 11, kind: input, shape index: {}]   ;;  %s1700_s12 = inlined_call_operand.vmem [shape: f32[1,10], index: 12, kind: input, shape index: {}]   ;;  %s1701_s13 = inlined_call_operand.vmem [shape: bf16[10,1], index: 13, kind: input, shape index: {}]   ;;  %s1702_s14 = inlined_call_operand.<no memory space> [shape: f32[1,1], index: 14, kind: input, shape index: {}]   ;;  %s1703_s15 = inlined_call_operand.vmem [shape: f32[64,25], index: 15, kind: output, shape index: {}]  }
   0x1   :  { %v20_v0 = vstv %s1702_s14 }
   0x2   :  { %21 = vst [vmem:[#allocation2] sm:$0x1] %v20_v0 }
   0x3 LB: > { %s1266_s21 = sadd.s32 4294967295, %s1485_s20   ;;  %p1270_p0 = scmp.ge.s32.totalorder %s1485_s20, 1  ;;  %s1485_s20 = sphi %s1574_s20, %s27_s20  }
   0x4   : > { %p451_p1 = scmp.lt.s32.totalorder %s1485_s20, 3 }
   0x6   : > { %p452_p2 = pnand %p1270_p0, %p451_p1 }
   0x7   : > { %v1413_v1 = vld [vmem:[%s1690_s2] sm:$0xff] (!%p452_p2)   ;;  %vm571_vm0 = vcmask (!%p452_p2), 1041408   ;;  %v1414_v2 = vld [vmem:[%s1690_s2 + $0x8] ss:$0 sps:$4 sm:$0x33] (!%p452_p2)   ;;  %s1271_s25 = sshll.u32 (!%p452_p2), %s1266_s21, 2 }
   0x8   : > { %455 = sbr.rel (%p452_p2) target bundleno = 1545 (0x609), region = 80  ;;  %1346 = vmatprep.subr.bf16.mxu0 (!%p452_p2), %v1413_v1  ;;  %v573_v3 = vsel (!%p452_p2), %vm571_vm0, %v1414_v2, 0  ;;  %p505_p3 = scmp.lt.s32.totalorder (!%p452_p2), %s1271_s25, 7  ;;  %vm564_vm1 = vcmask (!%p452_p2), 162816   ;;  %v1417_v6 = vld [vmem:[%s1692_s4] sm:$0xff] (!%p452_p2)   ;;  %vm659_vm2 = vcmask (!%p452_p2), 1043456  }
   0x9   : > { %1347 = vmatpush3.bf16.msra.mxu0 (!%p452_p2), %v1413_v1  ;;  %v1418_v7 = vld [vmem:[%s1692_s4 + $0x8] sm:$0x1f] (!%p452_p2)   ;;  %vm660_vm3 = vcmask (!%p452_p2), 1044480   ;;  %v1487_v8 = vmov (!%p452_p2), 65535   ;;  %1354 = vmatprep.subr.bf16.mxu1 (!%p452_p2), %v1417_v6  ;;  %v1277_v12 = vld [vmem:[%s1691_s3] ss:$0 sm:$0xff] (!%p452_p2) }
   0xa   : > { %1398 = vmatprep.subr.msk.bf16.mxu0 (!%p452_p2), %vm571_vm0, %v1414_v2  ;;  %v661_v9 = vsel (!%p452_p2), %vm659_vm2, 4294967295, %v1487_v8  ;;  %1355 = vmatpush3.bf16.msra.mxu1 (!%p452_p2), %v1417_v6  ;;  %vm652_vm4 = vcmask (!%p452_p2), 203776   ;;  %v737_v27 = vsel (!%p452_p2), %vm571_vm0, 4294967295, %v1487_v8  ;;  %v721_v28 = vld [vmem:[%s1694_s6] sm:$0x7] (!%p452_p2)  ;;  %vm736_vm5 = vcmask (!%p452_p2), 1042432  }
   0xb   : > { %v1612_v10 = vsel (!%p452_p2), %vm660_vm3, %v661_v9, 0  ;;  %v738_v29 = vsel (!%p452_p2), %vm736_vm5, %v737_v27, 0  ;;  %v1284_v31 = vld [vmem:[%s1693_s5] ss:$0 sm:$0xff] (!%p452_p2)  ;;  %vm729_vm6 = vcmask (!%p452_p2), 39936   ;;  %vm834_vm7 = vcmask (!%p452_p2), 130048  }
   0xc   : > { %v664_v11 = vand.u32 (!%p452_p2), %v1418_v7, %v1612_v10  ;;  %v740_v30 = vand.u32 (!%p452_p2), %v738_v29, %v721_v28  ;;  %v1419_v46 = vld [vmem:[%s1697_s9] sm:$0xff] (!%p452_p2)   ;;  %s1488_s18 = smov (!%p452_p2), 120   ;;  %s1489_s19 = smov (!%p452_p2), 1   ;;  %vm888_vm8 = vcmask (!%p452_p2), 64512   ;;  %vm1064_vm9 = vcmask (!%p452_p2), 80896  }
   0xd   : > { %1349 = vmatpush3.bf16.msra.mxu0 (!%p452_p2), %v573_v3  ;;  %v825_v47 = vld [vmem:[%s1696_s8] sm:$0xf] (!%p452_p2)  ;;  %s1490_s14 = smov (!%p452_p2), 17   ;;  %vm1179_vm10 = vcmask (!%p452_p2), 7168   ;;  %vm1184_vm11 = vcmask (!%p452_p2), 72704   ;;  %vm1189_vm12 = vcmask (!%p452_p2), 138240  }
   0xe   : > { %1356 = vmatprep.subr.bf16.mxu1 (!%p452_p2), %v664_v11  ;;  %1362 = vmatprep.subr.bf16.mxu0 (!%p452_p2), %v740_v30  ;;  %v1289_v48 = vld [vmem:[%s1695_s7] ss:$0 sm:$0xff] (!%p452_p2)  ;;  %v896_v60 = vsel (!%p452_p2), %vm659_vm2, %v825_v47, 0 }
   0xf   : > { %s1705_s25 = smov (!%p505_p3, %s1271_s25), 7  ;;  %1357 = vmatpush3.bf16.msra.mxu1 %v664_v11 }
  0x10   : > { %s1272_s26 = sshll.u32 %s1705_s25, 2  ;;  %1368 = vmatprep.subr.bf16.mxu1 %v1419_v46  ;;  %s1276_s21 = sshll.u32 %s1705_s25, 3 }
  0x11   : > { %s508_s29 = scalar_lea.vmem %s1688_s0, %s1272_s26  ;;  %s514_s23 = scalar_lea.vmem %s1689_s1, %s1272_s26 }
  0x12   : > { %v1598_v4 = vld [vmem:[%s508_s29] sm:$0xff]   ;;  %v1600_v5 = vld [vmem:[%s508_s29 + $0x8] sm:$0xff]  }
  0x13   : > { %1350 = vmatprep.mubr.msk.bf16.mxu0 %vm564_vm1, %v1598_v4  ;;  %v1321_v2 = vld [vmem:[%s514_s23 + $0x8] sm:$0xff]   ;;  %v1314_v3 = vld [vmem:[%s514_s23] sm:$0xff]  }
  0x14   : > { %1351 = vmatmul.mubr.msk.bf16.vlgmr.msra.gmra.mrb[0].mxu0 %vm564_vm1, %v1600_v5  ;;  %v1320_v9 = vunpack.c.h.bf16 %v1321_v2 }
  0x15   : > { %1363 = vmatpush3.bf16.msra.mxu0 %v740_v30 }
  0xe7   : > { %v1352_v13 = vpop.f32.mrb[0].mxu0 }
  0xe8   : > { %v618_v14 = vadd.f32 %v1352_v13, %v1277_v12  ;;  %v609_v15 = vpop.f32.mrb[1].mxu0 }
  0xe9   : > { %v610_v16 = vadd.f32 %v1277_v12, %v609_v15  ;;  %v1353_v17 = vpop.f32.mrb[2].mxu0 }
  0xea   : > { %1423 = vtanh.f32 %v618_v14  ;;  %v621_v18 = vadd.f32 %v1353_v17, %v1277_v12  ;;  %v612_v19 = vpop.f32.mrb[3].mxu0 }
  0xeb   : > { %1425 = vtanh.f32 %v610_v16  ;;  %v613_v20 = vadd.f32 %v1277_v12, %v612_v19  ;;  %v1316_v12 = vunpack.c.h.bf16 %v1314_v3 }
  0xec   : > { %1427 = vtanh.f32 %v621_v18 }
  0xed   : > { %1429 = vtanh.f32 %v613_v20 }
  0xf4   : > { %v1424_v21 = vpop.eup %1423 }
  0xf5   : > { %v1426_v22 = vpop.eup %1425 }
  0xf6   : > { %v1428_v23 = vpop.eup %1427 }
  0xf7   : > { %v1430_v24 = vpop.eup %1429  ;;  %v629_v25 = vpack.c.bf16 %v1428_v23, %v1424_v21  ;;  %v1420_v23 = vld [vmem:[%s1699_s11] sm:$0xff]  }
  0xf8   : > { %v628_v26 = vpack.c.bf16 %v1430_v24, %v1426_v22  ;;  %v1421_v24 = vld [vmem:[%s1699_s11 + $0x8] sm:$0x1f]   ;;  %1380 = vmatprep.subr.bf16.mxu0 %v1420_v23 }
  0xfa   : > { %1358 = vmatprep.mubr.msk.bf16.mxu1 %vm652_vm4, %v628_v26  ;;  %v1297_v26 = vld [vmem:[%s1698_s10] ss:$0 sm:$0xff] }
  0xfb   : > { %1359 = vmatmul.mubr.msk.bf16.vlgmr.msra.gmra.mrb[0].mxu1 %vm652_vm4, %v629_v25  ;;  %v993_v25 = vand.u32 %v1421_v24, %v1612_v10 }
  0xfc   : > { %1370 = vmatprep.mubr.msk.bf16.mxu1 %vm834_vm7, %v1598_v4  ;;  %1369 = vmatpush3.bf16.msra.mxu1 %v1419_v46  ;;  %v1319_v4 = vunpack.c.l.bf16 %v1321_v2 }
  0xfd   : > { %1399 = vmatprep.subr.msk.bf16.mxu1 %vm659_vm2, %v825_v47 }
 0x103   : > { %1371 = vmatmul.mubr.msk.bf16.vlgmr.msra.gmra.mrb[4].mxu1 %vm834_vm7, %v1600_v5  ;;  %v1315_v5 = vunpack.c.l.bf16 %v1314_v3 }
 0x104   : > { %1375 = vmatpush3.bf16.msra.mxu1 %v896_v60 }
 0x1ce   : > { %v1360_v32 = vpop.f32.mrb[0].mxu1 }
 0x1cf   : > { %v709_v33 = vadd.f32 %v1360_v32, %v1284_v31  ;;  %v700_v34 = vpop.f32.mrb[1].mxu1 }
 0x1d0   : > { %v701_v35 = vadd.f32 %v1284_v31, %v700_v34  ;;  %v1361_v36 = vpop.f32.mrb[2].mxu1 }
 0x1d1   : > { %1431 = vtanh.f32 %v709_v33  ;;  %v712_v37 = vadd.f32 %v1361_v36, %v1284_v31  ;;  %v703_v38 = vpop.f32.mrb[3].mxu1 }
 0x1d2   : > { %1433 = vtanh.f32 %v701_v35  ;;  %v704_v39 = vadd.f32 %v1284_v31, %v703_v38 }
 0x1d3   : > { %1435 = vtanh.f32 %v712_v37 }
 0x1d4   : > { %1437 = vtanh.f32 %v704_v39 }
 0x1db   : > { %v1432_v40 = vpop.eup %1431 }
 0x1dc   : > { %v1434_v41 = vpop.eup %1433 }
 0x1dd   : > { %v1436_v42 = vpop.eup %1435 }
 0x1de   : > { %v1438_v43 = vpop.eup %1437  ;;  %v720_v44 = vpack.c.bf16 %v1436_v42, %v1432_v40  ;;  %v1422_v40 = vld [vmem:[%s1701_s13] sm:$0x1f]  }
 0x1df   : > { %v719_v45 = vpack.c.bf16 %v1438_v43, %v1434_v41  ;;  %v1072_v41 = vsel %vm660_vm3, %v1422_v40, 0  ;;  %v1298_v42 = vld [vmem:[%s1700_s12] ss:$0 sm:$0xff] }
 0x1e1   : > { %1364 = vmatprep.mubr.msk.bf16.mxu0 %vm729_vm6, %v719_v45 }
 0x1e2   : > { %1365 = vmatmul.mubr.msk.bf16.vlgmr.msra.gmra.mrb[4].mxu0 %vm729_vm6, %v720_v44 }
 0x1e3   : > { %1381 = vmatpush3.bf16.msra.mxu0 %v1420_v23 }
 0x1e4   : > { %1382 = vmatprep.subr.bf16.mxu0 %v993_v25 }
 0x1e7   : > { %1383 = vmatpush3.bf16.msra.mxu0 %v993_v25 }
 0x1e8   : > { %1400 = vmatprep.subr.msk.bf16.mxu0 %vm660_vm3, %v1422_v40 }
 0x2b5   : > { %v1366_v49 = vpop.f32.mrb[4].mxu0 }
 0x2b6   : > { %v785_v50 = vadd.f32 %v1366_v49, %v1289_v48  ;;  %v776_v51 = vpop.f32.mrb[5].mxu0 }
 0x2b7   : > { %v777_v52 = vadd.f32 %v1289_v48, %v776_v51  ;;  %v1367_v53 = vpop.f32.mrb[6].mxu0 }
 0x2b8   : > { %v795_v54 = vmul.f32 1.442695, %v785_v50  ;;  %v788_v55 = vadd.f32 %v1367_v53, %v1289_v48  ;;  %v779_v56 = vpop.f32.mrb[7].mxu0 }
 0x2b9   : > { %v791_v57 = vmul.f32 1.442695, %v777_v52  ;;  %v780_v58 = vadd.f32 %v1289_v48, %v779_v56 }
 0x2ba   : > { %1439 = vpow2.f32 %v795_v54  ;;  %v797_v59 = vmul.f32 1.442695, %v788_v55 }
 0x2bb   : > { %1441 = vpow2.f32 %v791_v57  ;;  %v793_v61 = vmul.f32 1.442695, %v780_v58  ;;  %v1303_v57 = vld [vmem:[#allocation2] ss:$0 sm:$0xff] }
 0x2bc   : > { %1443 = vpow2.f32 %v797_v59 }
 0x2bd   : > { %1445 = vpow2.f32 %v793_v61 }
 0x2c4   : > { %v1440_v62 = vpop.eup %1439 }
 0x2c5   : > { %v1442_v63 = vpop.eup %1441  ;;  %807 = vrot.lane.b32.xlu1 %v1440_v62, %s1488_s18 }
 0x2c6   : > { %803 = vrot.lane.b32.xlu0 %v1442_v63, %s1488_s18  ;;  %v1444_v0 = vpop.eup %1443 }
 0x2c7   : > { %v1446_v1 = vpop.eup %1445 }
 0x2c9   : > { %809 = vrot.lane.b32.xlu1 %v1444_v0, %s1488_s18 }
 0x2ca   : > { %805 = vrot.lane.b32.xlu0 %v1446_v1, %s1488_s18 }
 0x2cd   : > { %1153 = vrot.lane.b32.xlu1 %v780_v58, %s1489_s19 }
 0x2ce   : > { %1151 = vrot.lane.b32.xlu0 %v777_v52, %s1489_s19 }
 0x2d2   : > { %1155 = vrot.lane.b32.xlu0 %v785_v50, %s1489_s19 }
 0x2d6   : > { %1157 = vrot.lane.b32.xlu0 %v788_v55, %s1489_s19 }
 0x337   : > { %v808_v6 = vpop.permute.xlu1 %807 }
 0x338   : > { %v817_v7 = vmul.f32 %v1319_v4, %v808_v6  ;;  %v804_v8 = vpop.permute.xlu0 %803 }
 0x339   : > { %v815_v11 = vmul.f32 %v1315_v5, %v804_v8 }
 0x33a   : > { %v821_v13 = vadd.f32 %v817_v7, %v785_v50 }
 0x33b   : > { %v819_v14 = vadd.f32 %v815_v11, %v777_v52  ;;  %v810_v15 = vpop.permute.xlu1 %809 }
 0x33c   : > { %v818_v16 = vmul.f32 %v1320_v9, %v810_v15  ;;  %1171 = vrot.lane.b32.xlu0 %v821_v13, %s1490_s14  ;;  %v806_v17 = vpop.permute.xlu0 %805 }
 0x33d   : > { %v816_v18 = vmul.f32 %v1316_v12, %v806_v17  ;;  %1167 = vrot.lane.b32.xlu1 %v819_v14, %s1490_s14 }
 0x33e   : > { %v822_v19 = vadd.f32 %v818_v16, %v788_v55 }
 0x33f   : > { %v820_v20 = vadd.f32 %v816_v18, %v780_v58  ;;  %v1154_v15 = vpop.permute.xlu1 %1153 }
 0x340   : > { %v824_v22 = vpack.c.bf16 %v822_v19, %v821_v13  ;;  %v1152_v13 = vpop.permute.xlu0 %1151 }
 0x341   : > { %v823_v21 = vpack.c.bf16 %v820_v20, %v819_v14  ;;  %1169 = vrot.lane.b32.xlu1 %v820_v20, %s1490_s14 }
 0x343   : > { %1376 = vmatprep.mubr.msk.bf16.mxu1 %vm888_vm8, %v823_v21 }
 0x344   : > { %1377 = vmatmul.mubr.msk.bf16.vlgmr.msra.gmra.mrb[4].mxu1 %vm888_vm8, %v824_v22  ;;  %v1156_v18 = vpop.permute.xlu0 %1155 }
 0x345   : > { %1173 = vrot.lane.b32.xlu1 %v822_v19, %s1490_s14  ;;  %s520_s14 = scalar_lea.vmem %s1703_s15, %s1276_s21 }
 0x348   : > { %v1158_v24 = vpop.permute.xlu0 %1157 }
 0x3af   : > { %v1168_v17 = vpop.permute.xlu1 %1167 }
 0x3b3   : > { %v1170_v21 = vpop.permute.xlu1 %1169 }
 0x417   : > { %v1378_v27 = vpop.f32.mrb[4].mxu1 }
 0x418   : > { %v956_v28 = vadd.f32 %v1378_v27, %v1297_v26  ;;  %v932_v29 = vpop.f32.mrb[5].mxu1 }
 0x419   : > { %v954_v30 = vadd.f32 %v1297_v26, %v932_v29  ;;  %v1379_v31 = vpop.f32.mrb[6].mxu1 }
 0x41a   : > { %1447 = vtanh.f32 %v956_v28  ;;  %v957_v32 = vadd.f32 %v1379_v31, %v1297_v26  ;;  %v935_v33 = vpop.f32.mrb[7].mxu1 }
 0x41b   : > { %1449 = vtanh.f32 %v954_v30  ;;  %v955_v34 = vadd.f32 %v1297_v26, %v935_v33 }
 0x41c   : > { %1451 = vtanh.f32 %v957_v32 }
 0x41d   : > { %1453 = vtanh.f32 %v955_v34  ;;  %v1172_v34 = vpop.permute.xlu0 %1171 }
 0x424   : > { %v1448_v10 = vpop.eup %1447 }
 0x425   : > { %v1450_v35 = vpop.eup %1449 }
 0x426   : > { %v1452_v36 = vpop.eup %1451 }
 0x427   : > { %v1454_v37 = vpop.eup %1453  ;;  %v963_v38 = vpack.c.bf16 %v1452_v36, %v1448_v10 }
 0x428   : > { %v962_v39 = vpack.c.bf16 %v1454_v37, %v1450_v35  ;;  %v1174_v35 = vpop.permute.xlu1 %1173 }
 0x42a   : > { %1384 = vmatprep.mubr.msk.bf16.mxu0 %vm652_vm4, %v962_v39 }
 0x42b   : > { %1385 = vmatmul.mubr.msk.bf16.vlgmr.msra.gmra.mrb[8].mxu0 %vm652_vm4, %v963_v38 }
 0x42c   : > { %1389 = vmatpush3.bf16.msra.mxu0 %v1072_v41 }
 0x4fe   : > { %v1386_v43 = vpop.f32.mrb[8].mxu0 }
 0x4ff   : > { %v1038_v44 = vadd.f32 %v1386_v43, %v1298_v42  ;;  %v1029_v45 = vpop.f32.mrb[9].mxu0 }
 0x500   : > { %v1030_v46 = vadd.f32 %v1298_v42, %v1029_v45  ;;  %v1387_v47 = vpop.f32.mrb[10].mxu0 }
 0x501   : > { %1455 = vtanh.f32 %v1038_v44  ;;  %v1041_v48 = vadd.f32 %v1387_v47, %v1298_v42  ;;  %v1032_v49 = vpop.f32.mrb[11].mxu0 }
 0x502   : > { %1457 = vtanh.f32 %v1030_v46  ;;  %v1033_v50 = vadd.f32 %v1298_v42, %v1032_v49 }
 0x503   : > { %1459 = vtanh.f32 %v1041_v48 }
 0x504   : > { %1461 = vtanh.f32 %v1033_v50 }
 0x50b   : > { %v1456_v51 = vpop.eup %1455 }
 0x50c   : > { %v1458_v52 = vpop.eup %1457 }
 0x50d   : > { %v1460_v53 = vpop.eup %1459 }
 0x50e   : > { %v1462_v54 = vpop.eup %1461  ;;  %v1049_v55 = vpack.c.bf16 %v1460_v53, %v1456_v51 }
 0x50f   : > { %v1048_v56 = vpack.c.bf16 %v1462_v54, %v1458_v52 }
 0x511   : > { %1390 = vmatprep.mubr.msk.bf16.mxu0 %vm1064_vm9, %v1048_v56 }
 0x512   : > { %1391 = vmatmul.mubr.msk.bf16.vlgmr.msra.gmra.mrb[12].mxu0 %vm1064_vm9, %v1049_v55 }
 0x5e5   : > { %v1392_v58 = vpop.f32.mrb[12].mxu0 }
 0x5e6   : > { %v1117_v59 = vadd.f32 %v1392_v58, %v1303_v57  ;;  %v1108_v60 = vpop.f32.mrb[13].mxu0 }
 0x5e7   : > { %v1109_v61 = vadd.f32 %v1303_v57, %v1108_v60  ;;  %v1393_v62 = vpop.f32.mrb[14].mxu0 }
 0x5e8   : > { %v1309_v63 = vmul.f32 -1.442695, %v1117_v59  ;;  %v1120_v0 = vadd.f32 %v1393_v62, %v1303_v57  ;;  %v1111_v1 = vpop.f32.mrb[15].mxu0 }
 0x5e9   : > { %v1307_v2 = vmul.f32 -1.442695, %v1109_v61  ;;  %v1112_v3 = vadd.f32 %v1303_v57, %v1111_v1 }
 0x5ea   : > { %1463 = vpow2.f32 %v1309_v63  ;;  %v1310_v4 = vmul.f32 -1.442695, %v1120_v0 }
 0x5eb   : > { %1465 = vpow2.f32 %v1307_v2  ;;  %v1308_v5 = vmul.f32 -1.442695, %v1112_v3 }
 0x5ec   : > { %1467 = vpow2.f32 %v1310_v4 }
 0x5ed   : > { %1469 = vpow2.f32 %v1308_v5 }
 0x5f4   : > { %v1464_v6 = vpop.eup %1463 }
 0x5f5   : > { %v1466_v7 = vpop.eup %1465  ;;  %v1137_v8 = vadd.f32 1.0, %v1464_v6 }
 0x5f6   : > { %v1468_v9 = vpop.eup %1467  ;;  %v1135_v11 = vadd.f32 1.0, %v1466_v7 }
 0x5f7   : > { %v1470_v12 = vpop.eup %1469  ;;  %1471 = vrcp.f32 %v1137_v8  ;;  %v1138_v14 = vadd.f32 1.0, %v1468_v9 }
 0x5f8   : > { %1473 = vrcp.f32 %v1135_v11  ;;  %v1136_v16 = vadd.f32 1.0, %v1470_v12 }
 0x5f9   : > { %1475 = vrcp.f32 %v1138_v14 }
 0x5fa   : > { %1477 = vrcp.f32 %v1136_v16 }
 0x601   : > { %v1472_v19 = vpop.eup %1471 }
 0x602   : > { %v1474_v20 = vpop.eup %1473  ;;  %v1182_v22 = vsel %vm1179_vm10, %v1472_v19, %v1156_v18 }
 0x603   : > { %v1476_v23 = vpop.eup %1475  ;;  %v1180_v25 = vsel %vm1179_vm10, %v1474_v20, %v1152_v13  ;;  %v1187_v29 = vsel %vm1184_vm11, %v1182_v22, %v1156_v18 }
 0x604   : > { %v1478_v26 = vpop.eup %1477  ;;  %v1185_v27 = vsel %vm1184_vm11, %v1180_v25, %v1152_v13  ;;  %v1183_v28 = vsel %vm1179_vm10, %v1476_v23, %v1158_v24  ;;  %v1192_v36 = vsel %vm1189_vm12, %v1187_v29, %v1172_v34 }
 0x605   : > { %v1190_v30 = vsel %vm1189_vm12, %v1185_v27, %v1168_v17  ;;  %v1181_v31 = vsel %vm1179_vm10, %v1478_v26, %v1154_v15  ;;  %v1188_v32 = vsel %vm1184_vm11, %v1183_v28, %v1158_v24  ;;  %1196 = vst.msk [vmem:[%s520_s14 + $0x10] sm:$0xff] %vm652_vm4, %v1192_v36 }
 0x606   : > { %1194 = vst.msk [vmem:[%s520_s14] sm:$0xff] %vm652_vm4, %v1190_v30  ;;  %v1186_v33 = vsel %vm1184_vm11, %v1181_v31, %v1154_v15  ;;  %v1193_v37 = vsel %vm1189_vm12, %v1188_v32, %v1174_v35 }
 0x607   : > { %v1191_v10 = vsel %vm1189_vm12, %v1186_v33, %v1170_v21  ;;  %1197 = vst.msk [vmem:[%s520_s14 + $0x18] sm:$0xff] %vm652_vm4, %v1193_v37 }
 0x608   : > { %1195 = vst.msk [vmem:[%s520_s14 + $0x8] sm:$0xff] %vm652_vm4, %v1191_v10 }
 0x609 PF: > { %s27_s20 = sadd.s32 1, %s1485_s20  }
 0x60a   : > { %p24_p4 = scmp.ge.s32.totalorder %s27_s20, 4  }
 0x60c   :  { %26 = sbr.rel (!%p24_p4) target bundleno = 3 (0x3), region = 113 }

</bundles_post_ra>
